<compile_context>
chip_gen: v5e
topology: v5e:2x2
jax: 0.10.0
libtpu: 0.0.40
codegen_flags: <defaults>
</compile_context>

<pallas_src>
import functools

import jax
import jax.numpy as jnp
import numpy as np
from jax import lax
from jax.experimental import pallas as pl
from jax.experimental.pallas import tpu as pltpu


def _rotate_half(t):
    """rotate_half on the last (dim_head) axis of a 2-D tile."""
    # NOTE: pltpu.roll + a sign-folded sin table would move this to the XLU slot,
    # but RoPE now runs only once per token (kv precompute) / once per q tile,
    # so the lane-slice concat is off the hot path and kept for robustness.
    half = t.shape[-1] // 2
    return jnp.concatenate([-t[:, half:], t[:, :half]], axis=-1)


def _layernorm(x, gamma, beta):
    mu = jnp.mean(x, axis=-1, keepdims=True)
    xc = x - mu
    var = jnp.mean(xc * xc, axis=-1, keepdims=True)
    return xc * lax.rsqrt(var + 1e-5) * gamma + beta


# -----------------------------------------------------------------------------
# Pass 1: per-token K (rotary embedded) and V, computed once per (batch, kv tile).
# -----------------------------------------------------------------------------
def _kv_precompute_kernel(x_ref, gamma_ref, beta_ref, wkv_ref, cos_ref, sin_ref,
                          k_ref, v_ref, *, dim_head, matmul_dtype):
    xn = _layernorm(x_ref[0], gamma_ref[...], beta_ref[...])          # (blk_k, D)
    kv = jnp.dot(xn.astype(matmul_dtype), wkv_ref[...],
                 preferred_element_type=jnp.float32)                  # (blk_k, 2*dh)
    k_proj = kv[:, :dim_head]
    v_proj = kv[:, dim_head:]
    cos = cos_ref[...]
    sin = sin_ref[...]
    k_rot = k_proj * cos + _rotate_half(k_proj) * sin                 # f32
    k_ref[0] = k_rot.astype(k_ref.dtype)
    v_ref[0] = v_proj.astype(v_ref.dtype)


# -----------------------------------------------------------------------------
# Pass 2: attention (online softmax over kv tiles) + SwiGLU FF, fused.
# -----------------------------------------------------------------------------
def _ptb_kernel(x_ref, gamma_ref, beta_ref,
                wq_ref, wff_ref, wattn_ref, wffout_ref,
                cos_q_ref, sin_q_ref, k_ref, v_ref,
                o_ref,
                q_scr, ffout_scr, m_scr, l_scr, acc_scr,
                *, heads, dim_head, ff_inner, scale, blk_q, blk_k,
                matmul_dtype, approx_recip):
    qi = pl.program_id(1)
    ki = pl.program_id(2)
    q_start = qi * blk_q
    k_start = ki * blk_k
    # Last kv tile that contains any un-masked (kpos <= qpos) column for this
    # q tile.  Later kv steps are dead: their DMA is also clamped away in the
    # K/V index_map and finalize runs here instead of at ki == n_k - 1.
    last_valid_ki = (q_start + blk_q - 1) // blk_k

    def mm(a, b):
        return jnp.dot(a.astype(matmul_dtype), b.astype(matmul_dtype),
                       preferred_element_type=jnp.float32)

    # ---------------------- once per q tile (first kv step) -------------------
    @pl.when(ki == 0)
    def _init():
        xn = _layernorm(x_ref[0], gamma_ref[...], beta_ref[...])      # (blk_q, D)

        # Q projection for ALL heads in one matmul, head-major row stacking.
        q_all = mm(xn, wq_ref[...])                                   # (blk_q, H*dh)
        q_st = jnp.concatenate(
            [q_all[:, e * dim_head:(e + 1) * dim_head] for e in range(heads)],
            axis=0)                                                   # (H*blk_q, dh)
        cos_q = cos_q_ref[...]                                        # (blk_q, dh)
        sin_q = sin_q_ref[...]
        cos_qs = jnp.concatenate([cos_q] * heads, axis=0)
        sin_qs = jnp.concatenate([sin_q] * heads, axis=0)
        q_scr[...] = ((q_st * cos_qs + _rotate_half(q_st) * sin_qs)
                      * scale).astype(q_scr.dtype)

        # SwiGLU feed-forward branch, resolved all the way to (blk_q, D).
        ffp = mm(xn, wff_ref[...])                                    # (blk_q, 2*ffi)
        ff_x = ffp[:, :ff_inner]
        gate = ffp[:, ff_inner:]
        ffout_scr[...] = mm(ff_x * (gate * jax.nn.sigmoid(gate)), wffout_ref[...])

        # flash-attention accumulators.  kv tile 0 always contains column 0,
        # which is un-masked for every causal query row, so m becomes finite on
        # the very first online-softmax update (no all-masked-row NaNs).
        m_scr[...] = jnp.full(m_scr.shape, -jnp.inf, jnp.float32)
        l_scr[...] = jnp.zeros(l_scr.shape, jnp.float32)
        acc_scr[...] = jnp.zeros(acc_scr.shape, jnp.float32)

    # ---------------------- per kv tile (skip dead upper-triangle) ------------
    @pl.when(ki <= last_valid_ki)
    def _attend():
        k_t = k_ref[0]                          # (blk_k, dh), precomputed K_rot
        v_t = v_ref[0]                          # (blk_k, dh), precomputed V
        s = lax.dot_general(q_scr[...], k_t,
                            dimension_numbers=(((1,), (1,)), ((), ())),
                            preferred_element_type=jnp.float32)   # (H*blk_q, blk_k)

        def online_softmax_update(scores):
            m_prev = m_scr[...]
            m_new = jnp.maximum(m_prev, jnp.max(scores, axis=-1, keepdims=True))
            alpha = jnp.exp(m_prev - m_new)
            p = jnp.exp(scores - m_new)
            l_scr[...] = alpha * l_scr[...] + jnp.sum(p, axis=-1, keepdims=True)
            acc_scr[...] = alpha * acc_scr[...] + mm(p, v_t)
            m_scr[...] = m_new

        # Only tiles straddling the causal diagonal need the iota mask; all
        # earlier kv tiles are fully un-masked (cuts VALU work in the inner loop).
        straddles_diag = k_start + blk_k > q_start + 1

        @pl.when(straddles_diag)
        def _masked():
            rows = heads * blk_q
            qpos = q_start + (lax.broadcasted_iota(jnp.int32, (rows, blk_k), 0)
                              % blk_q)
            kpos = k_start + lax.broadcasted_iota(jnp.int32, (rows, blk_k), 1)
            neg_max = -jnp.finfo(jnp.float32).max
            online_softmax_update(jnp.where(kpos > qpos, neg_max, s))

        @pl.when(jnp.logical_not(straddles_diag))
        def _unmasked():
            online_softmax_update(s)

    # ---------------------- finalize at the LAST VALID kv tile ----------------
    @pl.when(ki == last_valid_ki)
    def _finalize():
        if approx_recip:
            inv_l = pl.reciprocal(l_scr[...], approx=True)     # EUP slot, ~free
        else:
            inv_l = 1.0 / l_scr[...]
        out_st = acc_scr[...] * inv_l                          # (H*blk_q, dh)
        out_h = jnp.concatenate(
            [out_st[e * blk_q:(e + 1) * blk_q, :] for e in range(heads)],
            axis=1)                                            # (blk_q, H*dh)
        attn_o = mm(out_h, wattn_ref[...])                     # (blk_q, D)
        o_ref[0] = (attn_o + ffout_scr[...]).astype(o_ref.dtype)


def parallel_transformer_block(x, params, *, heads, dim_head, ff_mult,
                               block_q=128, block_k=128,
                               matmul_dtype=jnp.bfloat16,
                               approx_reciprocal=True):
    """x: (B, N, D) float32. Returns (B, N, D) float32.

    block_q/block_k = 128 fills the v5e MXU; 256 is recommended on v6e (and on
    v7x once the weight footprint fits its 64 MiB VMEM).  matmul_dtype=bf16 is
    the MXU-native perf default; use float32 + approx_reciprocal=False for a
    strict validation path.  On v7x (2 TensorCores) make sure B * (N/block_q)
    >= 2 so the "parallel" grid axes give both cores work.
    """
    B, N, D = x.shape
    attn_inner = heads * dim_head
    ff_inner = D * ff_mult
    scale = dim_head ** (-0.5)

    blk_q = min(block_q, N)
    blk_k = min(block_k, N)
    assert N % blk_q == 0 and N % blk_k == 0, "seq length must divide tile sizes"
    n_q = N // blk_q
    n_k = N // blk_k

    x = x.astype(jnp.float32)

    # rotary tables (pure function of positions -> precomputed in the wrapper)
    inv_freq = 1.0 / (10000.0 ** (jnp.arange(0, dim_head, 2, dtype=jnp.float32)
                                  / dim_head))
    freqs = jnp.arange(N, dtype=jnp.float32)[:, None] * inv_freq[None, :]
    pos = jnp.concatenate([freqs, freqs], axis=-1)             # (N, dh)
    cos, sin = jnp.cos(pos), jnp.sin(pos)

    gamma = params["gamma"].reshape(1, D).astype(jnp.float32)
    beta = params["beta"].reshape(1, D).astype(jnp.float32)

    # Split the fused projection into lane-dense per-use weight slabs.
    w_fused = params["w_fused"]
    w_q = w_fused[:, :attn_inner].astype(matmul_dtype)
    w_kv = w_fused[:, attn_inner:attn_inner + 2 * dim_head].astype(matmul_dtype)
    w_ff = w_fused[:, attn_inner + 2 * dim_head:].astype(matmul_dtype)
    w_attn_out = params["w_attn_out"].astype(matmul_dtype)
    w_ff_out = params["w_ff_out"].astype(matmul_dtype)

    # ------------------------- Pass 1: K_rot / V precompute -------------------
    kv_kernel = functools.partial(_kv_precompute_kernel, dim_head=dim_head,
                                  matmul_dtype=matmul_dtype)
    kv_grid_spec = pltpu.PrefetchScalarGridSpec(
        num_scalar_prefetch=0,
        grid=(B, n_k),
        in_specs=[
            pl.BlockSpec((1, blk_k, D), lambda b, ki: (b, ki, 0)),        # x
            pl.BlockSpec((1, D), lambda b, ki: (0, 0)),                   # gamma
            pl.BlockSpec((1, D), lambda b, ki: (0, 0)),                   # beta
            pl.BlockSpec((D, 2 * dim_head), lambda b, ki: (0, 0)),        # w_kv
            pl.BlockSpec((blk_k, dim_head), lambda b, ki: (ki, 0)),       # cos
            pl.BlockSpec((blk_k, dim_head), lambda b, ki: (ki, 0)),       # sin
        ],
        out_specs=[
            pl.BlockSpec((1, blk_k, dim_head), lambda b, ki: (b, ki, 0)),  # K_rot
            pl.BlockSpec((1, blk_k, dim_head), lambda b, ki: (b, ki, 0)),  # V
        ],
    )
    k_all, v_all = pl.pallas_call(
        kv_kernel,
        out_shape=(jax.ShapeDtypeStruct((B, N, dim_head), matmul_dtype),
                   jax.ShapeDtypeStruct((B, N, dim_head), matmul_dtype)),
        grid_spec=kv_grid_spec,
        compiler_params=pltpu.CompilerParams(
            dimension_semantics=("parallel", "parallel")),
    )(x, gamma, beta, w_kv, cos, sin)

    # ------------------------- Pass 2: attention + FF --------------------------
    kernel = functools.partial(
        _ptb_kernel, heads=heads, dim_head=dim_head, ff_inner=ff_inner,
        scale=scale, blk_q=blk_q, blk_k=blk_k, matmul_dtype=matmul_dtype,
        approx_recip=approx_reciprocal)

    def _kv_index(b, qi, ki):
        # Clamp dead upper-triangle kv steps onto the last valid tile so Pallas
        # dedups the DMA (no wasted HBM reads for fully-masked causal tiles).
        last = (qi * blk_q + blk_q - 1) // blk_k
        return (b, jnp.minimum(ki, last), 0)

    def _vmem_limit_bytes(single_buffer_weights):
        wb = jnp.dtype(matmul_dtype).itemsize
        weight_elems = w_q.size + w_ff.size + w_attn_out.size + w_ff_out.size
        weight_bufs = 1 if single_buffer_weights else 2
        rows = heads * blk_q
        est = int(
            weight_bufs * weight_elems * wb                  # resident weight slabs
            + 2 * blk_q * D * 4                              # x q-tile (dbl-buffered)
            + 2 * 2 * blk_k * dim_head * wb                  # K + V tiles
            + 2 * 2 * blk_q * dim_head * 4                   # cos_q / sin_q tiles
            + 2 * blk_q * D * 4                              # output block
            + rows * dim_head * (wb + 4)                     # q_scr + acc scratch
            + 2 * rows * 128 * 4                             # m / l (lane padded)
            + blk_q * D * 4                                  # ff branch scratch
            + 4 * rows * max(blk_k, 128) * 4                 # score / prob temps
            + 2 * blk_q * 2 * ff_inner * 4                   # ff projection temps
            + 2 * blk_q * max(attn_inner, 2 * dim_head) * 4  # q_all / misc temps
        )
        limit = max(16 * 1024 * 1024, est * 3 // 2 + (2 << 20))
        try:
            cap = int(pltpu.get_tpu_info().vmem_capacity_bytes) * 9 // 10
        except Exception:  # fallback if the query is unavailable
            cap = 64 * 1024 * 1024
        return int(min(limit, cap))

    def _main_call(single_buffer_weights):
        # Constant-index weight blocks never change -> single-buffer them to
        # halve resident weight VMEM (critical on v7x's 64 MiB VMEM).
        wspec_kw = ({"pipeline_mode": pl.Buffered(1)}
                    if single_buffer_weights else {})
        const2 = lambda b, qi, ki: (0, 0)

        grid_spec = pltpu.PrefetchScalarGridSpec(
            num_scalar_prefetch=0,
            grid=(B, n_q, n_k),
            in_specs=[
                pl.BlockSpec((1, blk_q, D), lambda b, qi, ki: (b, qi, 0)),   # x (q)
                pl.BlockSpec((1, D), const2),                                # gamma
                pl.BlockSpec((1, D), const2),                                # beta
                pl.BlockSpec((D, attn_inner), const2, **wspec_kw),           # w_q
                pl.BlockSpec((D, 2 * ff_inner), const2, **wspec_kw),         # w_ff
                pl.BlockSpec((attn_inner, D), const2, **wspec_kw),           # w_attn_out
                pl.BlockSpec((ff_inner, D), const2, **wspec_kw),             # w_ff_out
                pl.BlockSpec((blk_q, dim_head), lambda b, qi, ki: (qi, 0)),  # cos (q)
                pl.BlockSpec((blk_q, dim_head), lambda b, qi, ki: (qi, 0)),  # sin (q)
                pl.BlockSpec((1, blk_k, dim_head), _kv_index),               # K_rot
                pl.BlockSpec((1, blk_k, dim_head), _kv_index),               # V
            ],
            out_specs=pl.BlockSpec((1, blk_q, D), lambda b, qi, ki: (b, qi, 0)),
            scratch_shapes=[
                pltpu.VMEM((heads * blk_q, dim_head), matmul_dtype),  # rope'd Q (stacked)
                pltpu.VMEM((blk_q, D), jnp.float32),                  # FF branch output
                pltpu.VMEM((heads * blk_q, 1), jnp.float32),          # m (running max)
                pltpu.VMEM((heads * blk_q, 1), jnp.float32),          # l (running denom)
                pltpu.VMEM((heads * blk_q, dim_head), jnp.float32),   # attention acc
            ],
        )
        return pl.pallas_call(
            kernel,
            out_shape=jax.ShapeDtypeStruct((B, N, D), jnp.float32),
            grid_spec=grid_spec,
            compiler_params=pltpu.CompilerParams(
                dimension_semantics=("parallel", "parallel", "arbitrary"),
                vmem_limit_bytes=_vmem_limit_bytes(single_buffer_weights)),
        )

    operands = (x, gamma, beta, w_q, w_ff, w_attn_out, w_ff_out, cos, sin,
                k_all, v_all)
    last_exc = None
    for single_buffer_weights in (True, False):
        try:
            return _main_call(single_buffer_weights)(*operands)
        except Exception as exc:
            # Guard: if single-buffered (pl.Buffered(1)) weight blocks are not
            # supported by this jax version, retry with default double buffering.
            last_exc = exc
    raise last_exc


# ----------------------------- pure-JAX reference ----------------------------
def reference(x, params, *, heads, dim_head, ff_mult):
    B, N, D = x.shape
    attn_inner = heads * dim_head
    ff_inner = D * ff_mult
    scale = dim_head ** (-0.5)

    mu = jnp.mean(x, -1, keepdims=True)
    var = jnp.mean((x - mu) ** 2, -1, keepdims=True)
    xn = (x - mu) / jnp.sqrt(var + 1e-5) * params["gamma"] + params["beta"]

    proj = xn @ params["w_fused"]
    q = proj[..., :attn_inner]
    k = proj[..., attn_inner:attn_inner + dim_head]
    v = proj[..., attn_inner + dim_head:attn_inner + 2 * dim_head]
    ff = proj[..., attn_inner + 2 * dim_head:]

    q = q.reshape(B, N, heads, dim_head).transpose(0, 2, 1, 3)   # (B,H,N,dh)

    inv_freq = 1.0 / (10000.0 ** (jnp.arange(0, dim_head, 2, dtype=jnp.float32)
                                  / dim_head))
    freqs = jnp.arange(N, dtype=jnp.float32)[:, None] * inv_freq[None, :]
    pos = jnp.concatenate([freqs, freqs], axis=-1)

    def rot_half(t):
        t1, t2 = jnp.split(t, 2, axis=-1)
        return jnp.concatenate([-t2, t1], axis=-1)

    def rope(t):
        return t * jnp.cos(pos) + rot_half(t) * jnp.sin(pos)

    q = rope(q) * scale
    k = rope(k)

    sim = jnp.einsum("bhid,bjd->bhij", q, k)
    causal = jnp.triu(jnp.ones((N, N), bool), 1)
    sim = jnp.where(causal, -jnp.finfo(jnp.float32).max, sim)
    sim = sim - jnp.max(sim, -1, keepdims=True)
    attn = jax.nn.softmax(sim, -1)
    out = jnp.einsum("bhij,bjd->bhid", attn, v)
    out = out.transpose(0, 2, 1, 3).reshape(B, N, attn_inner)

    ffx, gate = jnp.split(ff, 2, axis=-1)
    return out @ params["w_attn_out"] + (jax.nn.silu(gate) * ffx) @ params["w_ff_out"]


if __name__ == "__main__":
    B, N, D = 2, 8, 32
    heads, dim_head, ff_mult = 4, 16, 4
    attn_inner = heads * dim_head
    ff_inner = D * ff_mult
    total = attn_inner + 2 * dim_head + 2 * ff_inner

    key = jax.random.PRNGKey(0)
    kx, kf, ka, kw, kx2 = jax.random.split(key, 5)
    x = jax.random.normal(kx, (B, N, D), jnp.float32)
    params = dict(
        gamma=jnp.ones((D,), jnp.float32),
        beta=jnp.zeros((D,), jnp.float32),
        w_fused=jax.random.normal(kf, (D, total), jnp.float32) * 0.05,
        w_attn_out=jax.random.normal(ka, (attn_inner, D), jnp.float32) * 0.05,
        w_ff_out=jax.random.normal(kw, (ff_inner, D), jnp.float32) * 0.05,
    )

    ref = reference(x, params, heads=heads, dim_head=dim_head, ff_mult=ff_mult)

    # 1) strict validation path: f32 MXU operands, exact reciprocal.
    out_f32 = parallel_transformer_block(
        x, params, heads=heads, dim_head=dim_head, ff_mult=ff_mult,
        matmul_dtype=jnp.float32, approx_reciprocal=False)
    out_f32 = jax.block_until_ready(out_f32)
    np.testing.assert_allclose(np.asarray(out_f32), np.asarray(ref),
                               rtol=1e-3, atol=1e-3)

    # 2) default perf path: bf16 MXU operands (f32 accumulation), approx recip.
    out_bf16 = parallel_transformer_block(x, params, heads=heads,
                                          dim_head=dim_head, ff_mult=ff_mult)
    out_bf16 = jax.block_until_ready(out_bf16)
    np.testing.assert_allclose(np.asarray(out_bf16), np.asarray(ref),
                               rtol=5e-2, atol=5e-2)

    # 3) longer sequence (strict): exercises q/kv tiling, the clamped dead-tile
    #    DMA, diagonal-only masking and the early (last-valid-kv-tile) finalize.
    B2, N2 = 1, 256
    x2 = jax.random.normal(kx2, (B2, N2, D), jnp.float32)
    ref2 = reference(x2, params, heads=heads, dim_head=dim_head, ff_mult=ff_mult)
    out2 = parallel_transformer_block(
        x2, params, heads=heads, dim_head=dim_head, ff_mult=ff_mult,
        block_q=128, block_k=128, matmul_dtype=jnp.float32,
        approx_reciprocal=False)
    out2 = jax.block_until_ready(out2)
    np.testing.assert_allclose(np.asarray(out2), np.asarray(ref2),
                               rtol=1e-3, atol=1e-3)

    # 4) same long sequence on the default bf16 perf path.
    out2_bf16 = parallel_transformer_block(x2, params, heads=heads,
                                           dim_head=dim_head, ff_mult=ff_mult)
    out2_bf16 = jax.block_until_ready(out2_bf16)
    np.testing.assert_allclose(np.asarray(out2_bf16), np.asarray(ref2),
                               rtol=5e-2, atol=5e-2)

    print("KERNEL_OK")
</pallas_src>

<mosaic_0001>
module attributes {stable_mosaic.version = 11 : i64} {
  func.func @_kv_precompute_kernel(%arg0: i32, %arg1: i32, %arg2: memref<1x8x32xf32, #tpu.memory_space<vmem>>, %arg3: memref<1x32xf32, #tpu.memory_space<vmem>>, %arg4: memref<1x32xf32, #tpu.memory_space<vmem>>, %arg5: memref<32x32xf32, #tpu.memory_space<vmem>>, %arg6: memref<8x16xf32, #tpu.memory_space<vmem>>, %arg7: memref<8x16xf32, #tpu.memory_space<vmem>>, %arg8: memref<1x8x16xf32, #tpu.memory_space<vmem>>, %arg9: memref<1x8x16xf32, #tpu.memory_space<vmem>>) attributes {dimension_semantics = [#tpu.dimension_semantics<parallel>, #tpu.dimension_semantics<parallel>], iteration_bounds = array<i64: 2, 1>, scalar_prefetch = 0 : i64, scratch_operands = 0 : i64, tpu.core_type = #tpu.core_type<tc>, window_params = [{transform_indices = @transform_0, window_bounds = array<i64: 1, 8, 32>}, {pipeline_mode = #tpu.pipeline_mode<synchronous>, transform_indices = @transform_1, window_bounds = array<i64: 1, 32>}, {pipeline_mode = #tpu.pipeline_mode<synchronous>, transform_indices = @transform_2, window_bounds = array<i64: 1, 32>}, {pipeline_mode = #tpu.pipeline_mode<synchronous>, transform_indices = @transform_3, window_bounds = array<i64: 32, 32>}, {transform_indices = @transform_4, window_bounds = array<i64: 8, 16>}, {transform_indices = @transform_5, window_bounds = array<i64: 8, 16>}, {transform_indices = @transform_6, window_bounds = array<i64: 1, 8, 16>}, {transform_indices = @transform_7, window_bounds = array<i64: 1, 8, 16>}]} {
    %c0 = arith.constant 0 : index
    %c0_0 = arith.constant 0 : index
    %c0_1 = arith.constant 0 : index
    %0 = vector.load %arg2[%c0, %c0_0, %c0_1] : memref<1x8x32xf32, #tpu.memory_space<vmem>>, vector<1x8x32xf32>
    %1 = vector.shape_cast %0 : vector<1x8x32xf32> to vector<8x32xf32>
    %c0_2 = arith.constant 0 : index
    %c0_3 = arith.constant 0 : index
    %2 = vector.load %arg3[%c0_2, %c0_3] : memref<1x32xf32, #tpu.memory_space<vmem>>, vector<1x32xf32>
    %c0_4 = arith.constant 0 : index
    %c0_5 = arith.constant 0 : index
    %3 = vector.load %arg4[%c0_4, %c0_5] : memref<1x32xf32, #tpu.memory_space<vmem>>, vector<1x32xf32>
    %cst = arith.constant dense<0.000000e+00> : vector<8xf32>
    %4 = vector.multi_reduction <add>, %1, %cst [1] : vector<8x32xf32> to vector<8xf32>
    %5 = vector.shape_cast %4 : vector<8xf32> to vector<8x1xf32>
    %cst_6 = arith.constant 3.200000e+01 : f32
    %6 = vector.broadcast %cst_6 : f32 to vector<8x1xf32>
    %7 = arith.divf %5, %6 : vector<8x1xf32>
    %8 = vector.broadcast %7 : vector<8x1xf32> to vector<8x32xf32>
    %9 = arith.subf %1, %8 : vector<8x32xf32>
    %10 = arith.mulf %9, %9 : vector<8x32xf32>
    %cst_7 = arith.constant dense<0.000000e+00> : vector<8xf32>
    %11 = vector.multi_reduction <add>, %10, %cst_7 [1] : vector<8x32xf32> to vector<8xf32>
    %12 = vector.shape_cast %11 : vector<8xf32> to vector<8x1xf32>
    %cst_8 = arith.constant 3.200000e+01 : f32
    %13 = vector.broadcast %cst_8 : f32 to vector<8x1xf32>
    %14 = arith.divf %12, %13 : vector<8x1xf32>
    %cst_9 = arith.constant 9.99999974E-6 : f32
    %15 = vector.broadcast %cst_9 : f32 to vector<8x1xf32>
    %16 = arith.addf %14, %15 : vector<8x1xf32>
    %17 = math.rsqrt %16 : vector<8x1xf32>
    %18 = vector.broadcast %17 : vector<8x1xf32> to vector<8x32xf32>
    %19 = arith.mulf %9, %18 : vector<8x32xf32>
    %20 = vector.broadcast %2 : vector<1x32xf32> to vector<8x32xf32>
    %21 = arith.mulf %19, %20 : vector<8x32xf32>
    %22 = vector.broadcast %3 : vector<1x32xf32> to vector<8x32xf32>
    %23 = arith.addf %21, %22 : vector<8x32xf32>
    %c0_10 = arith.constant 0 : index
    %c0_11 = arith.constant 0 : index
    %24 = vector.load %arg5[%c0_10, %c0_11] : memref<32x32xf32, #tpu.memory_space<vmem>>, vector<32x32xf32>
    %cst_12 = arith.constant dense<0.000000e+00> : vector<8x32xf32>
    %25 = tpu.matmul %23, %24, %cst_12 {dimension_numbers = #tpu.dot_dimension_numbers<[1], [0], [0], [1], [0, 0, 1, 1], [], []>} : vector<8x32xf32>, vector<32x32xf32>, vector<8x32xf32> -> vector<8x32xf32>
    %26 = vector.extract_strided_slice %25 {offsets = [0, 0], sizes = [8, 16], strides = [1, 1]} : vector<8x32xf32> to vector<8x16xf32>
    %27 = vector.extract_strided_slice %25 {offsets = [0, 16], sizes = [8, 16], strides = [1, 1]} : vector<8x32xf32> to vector<8x16xf32>
    %c0_13 = arith.constant 0 : index
    %c0_14 = arith.constant 0 : index
    %28 = vector.load %arg6[%c0_13, %c0_14] : memref<8x16xf32, #tpu.memory_space<vmem>>, vector<8x16xf32>
    %c0_15 = arith.constant 0 : index
    %c0_16 = arith.constant 0 : index
    %29 = vector.load %arg7[%c0_15, %c0_16] : memref<8x16xf32, #tpu.memory_space<vmem>>, vector<8x16xf32>
    %30 = arith.mulf %26, %28 : vector<8x16xf32>
    %31 = vector.extract_strided_slice %26 {offsets = [0, 8], sizes = [8, 8], strides = [1, 1]} : vector<8x16xf32> to vector<8x8xf32>
    %cst_17 = arith.constant 0.000000e+00 : f32
    %32 = vector.broadcast %cst_17 : f32 to vector<8x8xf32>
    %33 = arith.subf %32, %31 : vector<8x8xf32>
    %34 = vector.extract_strided_slice %26 {offsets = [0, 0], sizes = [8, 8], strides = [1, 1]} : vector<8x16xf32> to vector<8x8xf32>
    %35 = tpu.concatenate %33, %34 in 1 : vector<8x8xf32>, vector<8x8xf32> -> vector<8x16xf32>
    %36 = arith.mulf %35, %29 : vector<8x16xf32>
    %37 = arith.addf %30, %36 : vector<8x16xf32>
    %c0_18 = arith.constant 0 : index
    %c0_19 = arith.constant 0 : index
    %c0_20 = arith.constant 0 : index
    %38 = vector.load %arg8[%c0_18, %c0_19, %c0_20] : memref<1x8x16xf32, #tpu.memory_space<vmem>>, vector<1x8x16xf32>
    %39 = vector.shape_cast %38 : vector<1x8x16xf32> to vector<8x16xf32>
    %40 = vector.shape_cast %37 : vector<8x16xf32> to vector<1x8x16xf32>
    tpu.vector_store %arg8[%c0_18, %c0_19, %c0_20], %40 {strides = array<i32>} : memref<1x8x16xf32, #tpu.memory_space<vmem>>, vector<1x8x16xf32>,
    %c0_21 = arith.constant 0 : index
    %c0_22 = arith.constant 0 : index
    %c0_23 = arith.constant 0 : index
    %41 = vector.load %arg9[%c0_21, %c0_22, %c0_23] : memref<1x8x16xf32, #tpu.memory_space<vmem>>, vector<1x8x16xf32>
    %42 = vector.shape_cast %41 : vector<1x8x16xf32> to vector<8x16xf32>
    %43 = vector.shape_cast %27 : vector<8x16xf32> to vector<1x8x16xf32>
    tpu.vector_store %arg9[%c0_21, %c0_22, %c0_23], %43 {strides = array<i32>} : memref<1x8x16xf32, #tpu.memory_space<vmem>>, vector<1x8x16xf32>,
    return
  }
  func.func @transform_0(%arg0: i32, %arg1: i32) -> (i32, i32, i32) {
    %c0_i32 = arith.constant 0 : i32
    %c0_i32_0 = arith.constant 0 : i32
    return %arg0, %arg1, %c0_i32 : i32, i32, i32
  }
  func.func @transform_1(%arg0: i32, %arg1: i32) -> (i32, i32) {
    %c0_i32 = arith.constant 0 : i32
    %c0_i32_0 = arith.constant 0 : i32
    %c0_i32_1 = arith.constant 0 : i32
    return %c0_i32, %c0_i32_0 : i32, i32
  }
  func.func @transform_2(%arg0: i32, %arg1: i32) -> (i32, i32) {
    %c0_i32 = arith.constant 0 : i32
    %c0_i32_0 = arith.constant 0 : i32
    %c0_i32_1 = arith.constant 0 : i32
    return %c0_i32, %c0_i32_0 : i32, i32
  }
  func.func @transform_3(%arg0: i32, %arg1: i32) -> (i32, i32) {
    %c0_i32 = arith.constant 0 : i32
    %c0_i32_0 = arith.constant 0 : i32
    %c0_i32_1 = arith.constant 0 : i32
    return %c0_i32, %c0_i32_0 : i32, i32
  }
  func.func @transform_4(%arg0: i32, %arg1: i32) -> (i32, i32) {
    %c0_i32 = arith.constant 0 : i32
    %c0_i32_0 = arith.constant 0 : i32
    return %arg1, %c0_i32 : i32, i32
  }
  func.func @transform_5(%arg0: i32, %arg1: i32) -> (i32, i32) {
    %c0_i32 = arith.constant 0 : i32
    %c0_i32_0 = arith.constant 0 : i32
    return %arg1, %c0_i32 : i32, i32
  }
  func.func @transform_6(%arg0: i32, %arg1: i32) -> (i32, i32, i32) {
    %c0_i32 = arith.constant 0 : i32
    %c0_i32_0 = arith.constant 0 : i32
    return %arg0, %arg1, %c0_i32 : i32, i32, i32
  }
  func.func @transform_7(%arg0: i32, %arg1: i32) -> (i32, i32, i32) {
    %c0_i32 = arith.constant 0 : i32
    %c0_i32_0 = arith.constant 0 : i32
    return %arg0, %arg1, %c0_i32 : i32, i32, i32
  }
}

</mosaic_0001>

<bundles_post_ra>
// kernel: tpu_custom_call.1
= control target key start
LH: loop header
LB: loop body
LE: loop exit
PB: predicated region body
PF: predicated region fallthrough
CT: control target
= control target key end

     0   :  { %s1345_s0 = inlined_call_operand.hbm [shape: f32[2,8,32], index: 0, kind: input, shape index: {}]   ;;  %s1346_s1 = inlined_call_operand.hbm [shape: f32[1,32], index: 1, kind: input, shape index: {}]   ;;  %s1347_s2 = inlined_call_operand.vmem [shape: f32[1,32], index: 2, kind: input, shape index: {}]   ;;  %s1348_s3 = inlined_call_operand.hbm [shape: f32[32,32], index: 3, kind: input, shape index: {}]   ;;  %s1349_s4 = inlined_call_operand.hbm [shape: f32[8,16], index: 4, kind: input, shape index: {}]   ;;  %s1350_s5 = inlined_call_operand.hbm [shape: f32[8,16], index: 5, kind: input, shape index: {}]   ;;  %s1351_s6 = inlined_call_operand.hbm [shape: f32[2,8,16], index: 6, kind: output, shape index: {0}]   ;;  %s1352_s7 = inlined_call_operand.hbm [shape: f32[2,8,16], index: 7, kind: output, shape index: {1}]  }
   0x1   :  { %1353 = sst [smem:[#allocation19_spill]] %s1346_s1 }
   0x2   :  { %1354 = sst [smem:[#allocation20_spill]] %s1348_s3 }
   0x3   :  { %13 = vsyncpa [#allocation3], 0 }
   0x4   :  { %15 = vsyncpa [#allocation3 + $0x1], 0 }
   0x5   :  { %16 = vsyncpa [#allocation6], 0 }
   0x6   :  { %17 = vsyncpa [#allocation9], 0 }
   0x7   :  { %18 = vsyncpa [#allocation4], 0 }
   0x8   :  { %20 = vsyncpa [#allocation4 + $0x1], 0 }
   0x9   :  { %21 = vsyncpa [#allocation13], 0 }
   0xa   :  { %23 = vsyncpa [#allocation13 + $0x1], 0  ;;  %s1152_s24 = smov 0   ;;  %s1154_s25 = smov 0  }
   0xb   :  { %s1156_s26 = smov 0   ;;  %s1158_s27 = smov 0  }
   0xc   :  { %s1160_s28 = smov 0   ;;  %s1162_s29 = smov 0  }
   0xd LB: > { %s683_s30 = sadd.s32 4294967295, %s1100_s29   ;;  %p685_p0 = scmp.ge.s32.totalorder %s1100_s29, 1  ;;  %s1100_s29 = sphi %s1162_s29, %s29_s29   ;;  %s1096_s28 = sphi %s1160_s28, %s1367_s28   ;;  %s1092_s27 = sphi %s1158_s27, %s1366_s27   ;;  %s1088_s26 = sphi %s1156_s26, %s1365_s26   ;;  %s1084_s25 = sphi %s1154_s25, %s1364_s25   ;;  %s1080_s24 = sphi %s1152_s24, %s1363_s24  }
   0xe   : > { %p1186_p1 = scmp.eq.s32.totalorder %s683_s30, 0  ;;  %p245_p2 = scmp.lt.s32.totalorder %s1100_s29, 3 }
   0xf   : > { %s1356_s1 = sld [smem:[#allocation19_spill]]  ;;  %p690_p4 = scmp.ge.s32.totalorder %s1100_s29, 2 }
  0x10   : > { %p1194_p3 = pnand %p685_p0, %p245_p2  ;;  %s1102_s13 = smov [#allocation5]  }
  0x11   : > { %s259_s14 = sshll.u32 %s1102_s13, 4  ;;  %s288_s17 = sshll.u32 %s1349_s4, 4  ;;  %s260_s14 = int_to_ptr.vmem [resolvable:$true] %s259_s14  ;;  %s289_s17 = int_to_ptr.hbm [resolvable:$true] %s288_s17 }
  0x12   : > { %p730_p5 = pneg %p1194_p3  ;;  %s1359_s3 = sld [smem:[#allocation20_spill]] }
  0x13   : > { %s1103_s22 = smov [#allocation8]   ;;  %s1104_s9 = smov [#allocation7]  }
  0x14   : > { %p1206_p6 = pnand %p730_p5, %p1186_p1  ;;  %s290_s23 = sshll.u32 %s1103_s22, 4  ;;  %s291_s23 = int_to_ptr.vmem [resolvable:$true] %s290_s23 }
  0x15   : > { %s257_s11 = sshll.u32 %s1356_s1, 4  ;;  %s273_s10 = sshll.u32 %s1104_s9, 4  ;;  %s258_s11 = int_to_ptr.hbm [resolvable:$true] %s257_s11  ;;  %s274_s10 = int_to_ptr.vmem [resolvable:$true] %s273_s10 }
  0x16   : > { %733 = dma.hbm_to_vmem [thread:$0]  (!%p1206_p6), %s258_s11, 16, %s260_s14, [#allocation6]  }
  0x17   : > { %739 = dma.hbm_to_vmem [thread:$0]  (!%p1206_p6), %s289_s17, 128, %s291_s23, [#allocation9]  }
  0x18   : > { %s271_s21 = sshll.u32 %s1359_s3, 4  ;;  %s302_s16 = sshll.u32 %s1350_s5, 4  ;;  %s272_s21 = int_to_ptr.hbm [resolvable:$true] %s271_s21  ;;  %s303_s16 = int_to_ptr.hbm [resolvable:$true] %s302_s16 }
  0x19   : > { %s1105_s11 = smov 128   ;;  %s1106_s14 = smov 8  }
  0x1a   : > { %736 = dma.hbm_to_vmem [thread:$0]  (!%p1206_p6), %s272_s21, 512, %s274_s10, [#allocation6], %s1105_s11, %s1105_s11, %s1106_s14  }
  0x1b   : > { %s1107_s17 = smov [#allocation10]   ;;  %s41_s20 = sadd.s32 1, %s1096_s28 }
  0x1c   : > { %s304_s19 = sshll.u32 %s1107_s17, 4  ;;  %s684_s22 = sadd.s32 4294967294, %s1100_s29   ;;  %s305_s19 = int_to_ptr.vmem [resolvable:$true] %s304_s19 }
  0x1d   : > { %742 = dma.hbm_to_vmem [thread:$0]  (!%p1206_p6), %s303_s16, 128, %s305_s19, [#allocation9]  }
  0x1e   : > { %p43_p7 = scmp.ge.s32.totalorder %s41_s20, 2  ;;  %s50_s23 = sadd.s32 1, %s1088_s26 }
  0x1f   : > { %p57_p8 = scmp.ne.s32.totalorder %s1088_s26, %s1084_s25  ;;  %p58_p9 = scmp.eq.s32.totalorder %s1100_s29, 0 }
  0x20   : > { %s1369_s20 = smov (%p43_p7, %s41_s20), 0  ;;  %p63_p10 = scmp.ne.s32.totalorder %s1084_s25, %s1080_s24 }
  0x21   : > { %s45_s21 = ssub.s32 %s1096_s28, %s1369_s20  ;;  %p204_p11 = scmp.eq.s32.totalorder %s683_s30, 1 }
  0x22   : > { %p48_p12 = scmp.eq.s32.totalorder %s45_s21, 0  ;;  %p1240_p13 = por %p1186_p1, %p63_p10 }
  0x23   : > { %p1244_p0 = por %p204_p11, %p57_p8  ;;  %p210_p2 = scmp.eq.s32.totalorder %s684_s22, 1 }
  0x24   : > { %s1249_s10 = scalar_select %p48_p12, %s1088_s26, %s50_s23  }
  0x25   : > { %p59_p5 = por %p58_p9, %p57_p8  ;;  %p1251_p6 = por %p210_p2, %p63_p10 }
  0x26   : > { %s315_s15 = sand.u32 1, %s1088_s26   ;;  %s692_s30 = sshll.u32 %s1096_s28, 3 }
  0x27   : > { %p758_p7 = scmp.lt.s32.totalorder %s1100_s29, 2  ;;  %s691_s16 = sshll.u32 %s315_s15, 3 }
  0x28   : > { %s324_s17 = scalar_lea.hbm %s1345_s0, %s692_s30  ;;  %s319_s21 = scalar_lea.vmem [#allocation2], %s691_s16 }
  0x29   : > { %s326_s19 = sshll.u32 %s324_s17, 4  ;;  %s328_s1 = sshll.u32 %s319_s21, 4  ;;  %s327_s19 = int_to_ptr.hbm [resolvable:$true] %s326_s19  ;;  %s329_s1 = int_to_ptr.vmem [resolvable:$true] %s328_s1 }
  0x2a   : > { %p744_p11 = pnand %p758_p7, %p59_p5  ;;  %s316_s22 = scalar_lea.sflag [#allocation3], %s315_s15 }
  0x2b   : > { %337 = sbr.rel (%p1194_p3) target bundleno = 581 (0x245), region = 44  ;;  %s1264_s23 = sand.u32 (!%p1194_p3), 1, %s1084_s25  }
  0x2c   : > { %746 = dma.hbm_to_vmem [thread:$0]  (!%p744_p11), %s327_s19, 128, %s329_s1, %s316_s22  }
  0x2d   : > { %s1267_s3 = sshll.u32 (!%p1194_p3), %s1264_s23, 3  ;;  %s340_s30 = scalar_lea.sflag (!%p1194_p3), [#allocation3], %s1264_s23 }
  0x2e   : > { %s343_s16 = scalar_lea.vmem (!%p1194_p3), [#allocation2], %s1267_s3 }
  0x30   : > { %1059 = dma.done.wait (%p1240_p13), %s340_s30, 128  }
  0x31   : > { %1061 = vsyncadd (%p1240_p13), %s340_s30, 4294967168 }
  0x32   : > { %1063 = dma.done.wait (%p1186_p1), [#allocation6], 528  }
  0x33   : > { %1065 = vsyncadd (%p1186_p1), [#allocation6], 4294966768 }
  0x34   : > { %1067 = dma.done.wait (%p1186_p1), [#allocation9], 256  }
  0x35   : > { %1069 = vsyncadd (%p1186_p1), [#allocation9], 4294967040  ;;  %vm403_vm0 = vcmask 261120   ;;  %v400_v0 = vld [vmem:[%s343_s16] sm:$0xff]  ;;  %v1108_v2 = vmov 32.0   ;;  %v441_v17 = vld [vmem:[#allocation7] sm:$0xff] }
  0x36   : > { %v404_v1 = vsel %vm403_vm0, %v400_v0, 0.0  ;;  %824 = vrcp.f32 %v1108_v2  ;;  %v444_v14 = vld [vmem:[#allocation7 + $0x18] sm:$0xff]  ;;  %v443_v15 = vld [vmem:[#allocation7 + $0x10] sm:$0xff]  ;;  %v442_v16 = vld [vmem:[#allocation7 + $0x8] sm:$0xff]  ;;  %s1109_s12 = smov 112   ;;  %s1110_s18 = smov 120  }
  0x37   : > { %405 = vadd.xlane.f32.xlu0 %v404_v1  ;;  %460 = vmatpush.msra.mxu0 %v444_v14  ;;  %v822_v27 = vld [vmem:[#allocation5] ss:$0 sm:$0xff]  ;;  %v823_v30 = vld [vmem:[%s1347_s2] ss:$0 sm:$0xff]  ;;  %s1111_s15 = smov 8   ;;  %s704_s11 = sshll.u32 %s1092_s27, 3 }
  0x38   : > { %s522_s19 = scalar_lea.hbm %s1352_s7, %s704_s11  ;;  %s399_s21 = scalar_lea.vmem [#allocation12], %s1267_s3  ;;  %vm484_vm5 = vcmask 130048  }
  0x39   : > { %461 = vmatpush.msra.mxu0 %v443_v15  ;;  %s524_s22 = sshll.u32 %s399_s21, 4  ;;  %s526_s30 = sshll.u32 %s522_s19, 4  ;;  %s525_s22 = int_to_ptr.vmem [resolvable:$true] %s524_s22  ;;  %s527_s30 = int_to_ptr.hbm [resolvable:$true] %s526_s30 }
  0x3a   : > { %s496_s16 = scalar_lea.sflag [#allocation13], %s1264_s23  ;;  %s992_s1 = sshra.s32 %s527_s30, 4  ;;  %s993_s1 = int_to_ptr.hbm [resolvable:$true] %s992_s1 }
  0x3b   : > { %462 = vmatpush.msra.mxu0 %v442_v16  ;;  %s994_s8 = scalar_lea.hbm %s993_s1, 8  ;;  %p999_p9 = scmp.lt.s32.totalorder %s993_s1, %s1352_s7 }
  0x3c   : > { %v825_v3 = vpop.eup %824  ;;  %p995_p1 = scmp.ne.s32.totalorder %s993_s1, %s994_s8 }
  0x3d   : > { %v408_v4 = vmul.f32 32.0, %v825_v3  ;;  %vm412_vm1 = vweird.f32 %v825_v3  ;;  %463 = vmatpush.msra.mxu0 %v441_v17 }
  0x3e   : > { %p996_p3 = pnand %p995_p1, %p1244_p0 }
  0x3f   : > { %v409_v5 = vsub.f32 1.0, %v408_v4 }
  0x40   : > { %p997_p8 = pneg %p996_p3 }
  0x41   : > { %v410_v6 = vmul.f32 %v825_v3, %v409_v5 }
  0x43   : > { %v411_v7 = vadd.f32 %v825_v3, %v410_v6 }
  0x45   : > { %v413_v8 = vsel %vm412_vm1, %v825_v3, %v411_v7 }
  0xaa   : > { %v406_v9 = vpop.xlane.xlu0 %405 }
  0xab   : > { %v414_v10 = vmul.f32 %v413_v8, %v406_v9 }
  0xad   : > { %v415_v11 = vsub.f32 %v400_v0, %v414_v10 }
  0xaf   : > { %v416_v12 = vmul.f32 %v415_v11, %v415_v11 }
  0xb1   : > { %v417_v13 = vsel %vm403_vm0, %v416_v12, 0.0 }
  0xb2   : > { %418 = vadd.xlane.f32.xlu0 %v417_v13 }
 0x125   : > { %v419_v18 = vpop.xlane.xlu0 %418 }
 0x126   : > { %v420_v19 = vmul.f32 %v419_v18, %v413_v8 }
 0x128   : > { %v421_v20 = vadd.f32 1e-05, %v420_v19 }
 0x12a   : > { %826 = vrsqrt.f32 %v421_v20  ;;  %vm428_vm3 = vweird.f32 %v421_v20 }
 0x130   : > { %v827_v21 = vpop.eup %826 }
 0x131   : > { %v423_v22 = vmul.f32 %v827_v21, %v421_v20  ;;  %vm429_vm2 = vweird.f32 %v827_v21 }
 0x132   : > { %vm430_vm4 = vmor %vm428_vm3, %vm429_vm2 }
 0x133   : > { %v424_v23 = vmul.f32 %v827_v21, %v423_v22 }
 0x135   : > { %v425_v24 = vmul.f32 0.5, %v424_v23 }
 0x137   : > { %v426_v25 = vsub.f32 1.5, %v425_v24 }
 0x139   : > { %v427_v26 = vmul.f32 %v827_v21, %v426_v25 }
 0x13b   : > { %v431_v28 = vsel %vm430_vm4, %v827_v21, %v427_v26 }
 0x13c   : > { %v432_v29 = vmul.f32 %v431_v28, %v415_v11 }
 0x13e   : > { %v436_v31 = vmul.f32 %v822_v27, %v432_v29 }
 0x140   : > { %v440_v32 = vadd.f32 %v823_v30, %v436_v31 }
 0x142   : > { %701 = vmatmul.msk.f32.vlgmr.msra.gmra.mxu0 %vm403_vm0, %v440_v32 }
 0x1bf   : > { %v465_v33 = vpop.f32.mrf.mxu0 }
 0x1c0   : > { %486 = vrot.lane.b32.xlu2 %v465_v33, %s1109_s12  ;;  %v471_v34 = vsub.f32 0.0, %v465_v33 }
 0x1c2   : > { %473 = vrot.lane.b32.xlu1 %v471_v34, %s1110_s18  ;;  %s998_s18 = scalar_lea.hbm %s1352_s7, 16 }
 0x1c3   : > { %p1000_p10 = scmp.lt.s32.totalorder %s998_s18, %s994_s8 }
 0x1c5   : > { %p1001_p12 = por %p1000_p10, %p999_p9 }
 0x1c7   : > { %p1002_p13 = pnand %p1001_p12, %p997_p8 }
 0x1ca   : > { %477 = vrot.lane.b32.xlu1 %v465_v33, %s1111_s15 }
 0x21a   : > { %v487_v35 = vpop.permute.xlu2 %486 }
 0x21b   : > { %489 = vst.msk [vmem:[%s399_s21] sm:$0xff] %vm484_vm5, %v487_v35 }
 0x21c   : > { %1005 = shalt.err (!%p1002_p13)
}
 0x21d   : > { %727 = dma.vmem_to_hbm [thread:$0]  (%p1244_p0), %s525_s22, 128, %s527_s30, %s496_s16   ;;  %vm480_vm6 = vcmask 64512   ;;  %v468_v37 = vld [vmem:[#allocation8] sm:$0xff]  ;;  %v469_v38 = vld [vmem:[#allocation10] sm:$0xff] }
 0x21e   : > { %s507_s21 = scalar_lea.hbm %s1351_s6, %s704_s11  ;;  %s392_s1 = scalar_lea.vmem [#allocation11], %s1267_s3  ;;  %v470_v41 = vmul.f32 %v468_v37, %v465_v33 }
 0x21f   : > { %s509_s8 = sshll.u32 %s392_s1, 4  ;;  %s511_s27 = sshll.u32 %s507_s21, 4  ;;  %s510_s8 = int_to_ptr.vmem [resolvable:$true] %s509_s8  ;;  %s512_s27 = int_to_ptr.hbm [resolvable:$true] %s511_s27 }
 0x220   : > { %s491_s22 = scalar_lea.sflag [#allocation4], %s1264_s23  ;;  %s1020_s30 = sshra.s32 %s512_s27, 4  ;;  %s1021_s30 = int_to_ptr.hbm [resolvable:$true] %s1020_s30 }
 0x221   : > { %s1022_s16 = scalar_lea.hbm %s1021_s30, 8  ;;  %s1026_s3 = scalar_lea.hbm %s1351_s6, 16 }
 0x222   : > { %p1023_p2 = scmp.ne.s32.totalorder %s1021_s30, %s1022_s16  ;;  %p1027_p11 = scmp.lt.s32.totalorder %s1021_s30, %s1351_s6 }
 0x223   : > { %p1028_p1 = scmp.lt.s32.totalorder %s1026_s3, %s1022_s16 }
 0x224   : > { %p1024_p5 = pnand %p1023_p2, %p1244_p0 }
 0x225   : > { %p1029_p3 = por %p1028_p1, %p1027_p11 }
 0x226   : > { %p1025_p7 = pneg %p1024_p5 }
 0x228   : > { %p1030_p8 = pnand %p1029_p3, %p1025_p7 }
 0x234   : > { %v474_v36 = vpop.permute.xlu1 %473 }
 0x23c   : > { %v478_v39 = vpop.permute.xlu1 %477 }
 0x23d   : > { %v481_v40 = vsel %vm480_vm6, %v474_v36, %v478_v39 }
 0x23e   : > { %v482_v42 = vmul.f32 %v481_v40, %v469_v38 }
 0x240   : > { %v483_v43 = vadd.f32 %v482_v42, %v470_v41 }
 0x242   : > { %485 = vst.msk [vmem:[%s392_s1] sm:$0xff] %vm484_vm5, %v483_v43 }
 0x243   : > { %1033 = shalt.err (!%p1030_p8)
}
 0x244   : > { %726 = dma.vmem_to_hbm [thread:$0]  (%p1244_p0), %s510_s8, 128, %s512_s27, %s491_s22  }
 0x245 PF: > { %s538_s23 = sand.u32 1, %s1080_s24   ;;  %p748_p9 = pnand %p690_p4, %p1251_p6 }
 0x246   : > { %s539_s14 = scalar_lea.sflag [#allocation4], %s538_s23 }
 0x247   : > { %p749_p10 = pneg %p748_p9 }
 0x249   : > { %1071 = dma.done.wait (%p749_p10), %s539_s14, 128  }
 0x24a   : > { %1073 = vsyncadd (%p749_p10), %s539_s14, 4294967168  ;;  %s549_s17 = scalar_lea.sflag [#allocation13], %s538_s23 }
 0x24b   : > { %1075 = dma.done.wait (%p749_p10), %s549_s17, 128  }
 0x24c   : > { %1077 = vsyncadd (%p749_p10), %s549_s17, 4294967168  ;;  %s29_s29 = sadd.s32 1, %s1100_s29   ;;  %s1363_s24 = smov %s1084_s25 }
 0x24d   : > { %p26_p12 = scmp.ge.s32.totalorder %s29_s29, 4   ;;  %s1364_s25 = smov %s1088_s26 }
 0x24e   : > { %s1365_s26 = smov %s1249_s10  ;;  %s1366_s27 = smov %s1096_s28 }
 0x24f   : > { %s1367_s28 = smov %s1369_s20  ;;  %28 = sbr.rel (!%p26_p12) target bundleno = 13 (0xd), region = 124 }
 0x254   :  { %555 = vsyncpa [#allocation3], 1 }
 0x255   :  { %557 = vsyncpa [#allocation3 + $0x1], 1 }
 0x256   :  { %558 = vsyncpa [#allocation6], 1 }
 0x257   :  { %559 = vsyncpa [#allocation9], 1 }
 0x258   :  { %560 = vsyncpa [#allocation4], 1 }
 0x259   :  { %562 = vsyncpa [#allocation4 + $0x1], 1 }
 0x25a   :  { %563 = vsyncpa [#allocation13], 1 }
 0x25b   :  { %565 = vsyncpa [#allocation13 + $0x1], 1 }

</bundles_post_ra>
